<compile_context>
chip_gen: v7x
topology: tpu7x:2x2x1
jax: 0.10.0
libtpu: 0.0.40
codegen_flags: <defaults>
</compile_context>

<pallas_src>
import jax
import jax.numpy as jnp
from jax import lax
from jax.experimental import pallas as pl
from jax.experimental.pallas import tpu as pltpu


def _feature_attention_kernel(x_ref, w_ref, b_ref, sel_ref, mask_ref, o_ref):
    """One grid step = one group of GROUP lane-packed instances.

    x_ref    (1, B, G*D)      packed inputs   (instance n -> cols [n*D,(n+1)*D))
    w_ref    (1, G*D, 3*G*E)  block-diagonal fused Q|K|V weights (Q pre-scaled)
    b_ref    (1, 1, 3*G*E)    fused Q|K|V bias (Q part pre-scaled)
    sel_ref  (G*B, B)         constant row-replication matrix: sel[a, j] = (a % B == j)
    mask_ref (G*B, G*E)       constant block mask (symmetric since B == E):
                              mask[a, r] = (a // B == r // E)
    o_ref    (1, B, G*E)      packed outputs  (instance n -> cols [n*E,(n+1)*E))
    """
    ge = mask_ref.shape[1]                       # G*E (static)

    x = x_ref[0]                                 # (B, G*D)
    w = w_ref[0]                                 # (G*D, 3*G*E)
    b = b_ref[0]                                 # (1, 3*G*E)

    # One full-width MXU pass produces Q|K|V for every instance in the group.
    # Operands stay in their native dtype; accumulation is f32.
    qkv = jnp.dot(x, w, preferred_element_type=jnp.float32) + b.astype(jnp.float32)
    q = qkv[:, :ge]                              # (B, G*E), 1/sqrt(E) already folded in
    k = qkv[:, ge:2 * ge]                        # (B, G*E)
    v = qkv[:, 2 * ge:]                          # (B, G*E)

    sel = sel_ref[...]                           # (G*B, B)
    mask = mask_ref[...]                         # (G*B, G*E)

    # Block-diagonal K: row a = n*B + j holds instance n's K row j, zeroed
    # outside instance n's E-lane block.  Built via a constant-matrix matmul
    # (row replication) + mask: no transpose, no lane-splitting reshape.
    k_blk = jnp.dot(sel, k, preferred_element_type=jnp.float32) * mask      # (G*B, G*E)

    # scores[i, n*B + j] = Q_n[i, :] . K_n[j, :]  (lanes outside block n are
    # exact zeros and contribute nothing).  Contract both last dims (trans_b
    # form, same pattern as the reference flash kernel).
    scores = lax.dot_general(q, k_blk, (((1,), (1,)), ((), ())),
                             preferred_element_type=jnp.float32)            # (B, G*B)

    # Per-instance softmax over each B-lane block.  Softmax is invariant to
    # the subtracted constant, so a per-row (cross-instance) max is
    # mathematically identical to the per-block max and keeps the math
    # lane-dense (no segmented max / relayout needed).
    m = jnp.max(scores, axis=-1, keepdims=True)
    p = jnp.exp(scores - m)
    # Per-block sums, broadcast back to every lane of the block, via one
    # full-width matmul against the (symmetric) block mask.
    denom = jnp.dot(p, mask, preferred_element_type=jnp.float32)            # (B, G*B)
    attn = p * pl.reciprocal(denom, approx=True)                            # EUP vrcp slot

    # PyTorch broadcast semantics: attn (B, B) * V (B, E) elementwise per
    # instance; with B == E the 8-lane blocks line up exactly, so the packed
    # multiply and the 128-lane store are both unmasked.
    o_ref[0] = (attn * v).astype(o_ref.dtype)


def pack_params(wq, bq, wk, bk, wv, bv):
    """One-time parameter packing (module-init time, not per call).

    Per-instance weights (N, D, E) / biases (N, E) ->
      w_packed (num_groups, G*D, 3*G*E)  block-diagonal fused Q|K|V weights,
                                         with 1/sqrt(E) folded into the Q third,
      b_packed (num_groups, 1, 3*G*E)    fused bias.
    N must be a multiple of GROUP = 128 // E (pad with dummy instances if not).
    """
    N, D, E = wq.shape
    assert 128 % E == 0, "embed_dim must divide 128 for lane packing"
    G = 128 // E
    assert N % G == 0, f"number of instances must be a multiple of {G}"
    ng = N // G

    inv_scale = (1.0 / jnp.sqrt(jnp.float32(E))).astype(wq.dtype)
    eye = jnp.eye(G, dtype=wq.dtype)

    def blockdiag(w):                              # (N, D, E) -> (ng, G*D, G*E)
        wg = w.reshape(ng, G, D, E)
        return jnp.einsum('gnde,nm->gndme', wg, eye).reshape(ng, G * D, G * E)

    def packb(b):                                  # (N, E) -> (ng, 1, G*E)
        return b.reshape(ng, 1, G * E)

    w_packed = jnp.concatenate(
        [blockdiag(wq * inv_scale), blockdiag(wk), blockdiag(wv)], axis=-1)
    b_packed = jnp.concatenate(
        [packb(bq * inv_scale), packb(bk), packb(bv)], axis=-1)
    return w_packed, b_packed


def feature_attention(x, w_packed, b_packed):
    """Batched FeatureAttention forward.

    x: (N, B, D) -- N independent module instances (N a multiple of 128//E),
    w_packed / b_packed: from pack_params.  Returns (N, B, E).
    """
    N, B, D = x.shape
    ng, gd, three_ge = w_packed.shape
    G = gd // D
    E = three_ge // (3 * G)
    assert B == E, "PyTorch broadcast (attn * V) requires batch_size == embed_dim"
    assert N == ng * G
    GB, GE = G * B, G * E
    dt = x.dtype

    # Pack instances along the lane axis: (N, B, D) -> (ng, B, G*D).
    # (A real deployment would keep activations in this layout end-to-end.)
    x_packed = x.reshape(ng, G, B, D).transpose(0, 2, 1, 3).reshape(ng, B, G * D)

    # Constant structure matrices (4 KiB + 64 KiB, fetched once per step).
    rows = jnp.arange(GB)
    sel = (rows[:, None] % B == jnp.arange(B)[None, :]).astype(jnp.float32)          # (G*B, B)
    blkmask = (rows[:, None] // B == (jnp.arange(GE) // E)[None, :]).astype(jnp.float32)  # (G*B, G*E)

    itemsize = jnp.dtype(dt).itemsize
    flops = ng * (2 * B * gd * three_ge        # fused block-diag Q|K|V projection
                  + 2 * GB * B * GE            # K row replication (sel @ k)
                  + 2 * B * GE * GB            # per-instance Q K^T
                  + 2 * B * GB * GE)           # per-instance softmax denominator
    cost = pl.CostEstimate(
        flops=flops,
        transcendentals=ng * B * GB,
        bytes_accessed=itemsize * (x_packed.size + w_packed.size + b_packed.size
                                   + N * B * E)
                       + 4 * (sel.size + blkmask.size))

    grid_spec = pltpu.PrefetchScalarGridSpec(
        num_scalar_prefetch=0,
        grid=(ng,),
        in_specs=[
            pl.BlockSpec((1, B, G * D), lambda g: (g, 0, 0)),        # packed x
            pl.BlockSpec((1, G * D, 3 * GE), lambda g: (g, 0, 0)),   # fused Q|K|V weights
            pl.BlockSpec((1, 1, 3 * GE), lambda g: (g, 0, 0)),       # fused bias
            pl.BlockSpec((GB, B), lambda g: (0, 0)),                 # sel (constant)
            pl.BlockSpec((GB, GE), lambda g: (0, 0)),                # block mask (constant)
        ],
        out_specs=pl.BlockSpec((1, B, GE), lambda g: (g, 0, 0)),
    )

    out_packed = pl.pallas_call(
        _feature_attention_kernel,
        out_shape=jax.ShapeDtypeStruct((ng, B, GE), dt),
        grid_spec=grid_spec,
        compiler_params=pltpu.CompilerParams(
            # Instance-group axis is embarrassingly parallel (no scratch, no
            # cross-step state) -> both v7x TCs get a step; plain loop on
            # v5e/v6e.
            dimension_semantics=("parallel",),
            # Per-step VMEM footprint (double-buffered) is ~1 MiB; 32 MiB is a
            # comfortable cap valid on every generation (v7x physical: 64 MiB).
            vmem_limit_bytes=32 * 1024 * 1024,
        ),
        cost_estimate=cost,
    )(x_packed, w_packed, b_packed, sel, blkmask)

    # Unpack (ng, B, G*E) -> (N, B, E).
    return out_packed.reshape(ng, B, G, E).transpose(0, 2, 1, 3).reshape(N, B, E)


def _reference_single(x, wq, bq, wk, bk, wv, bv):
    """Plain-JAX transcription of the PyTorch module's forward (one instance)."""
    q = x @ wq + bq
    k = x @ wk + bk
    v = x @ wv + bv
    scores = (q @ k.T) / jnp.sqrt(jnp.float32(wq.shape[-1]))
    attn = jax.nn.softmax(scores, axis=-1)
    return attn * v


if __name__ == "__main__":
    # Small shapes consistent with the module: batch_size == embed_dim (see
    # semantics note).  32 independent instances = 2 lane-packed groups of 16
    # -> a 2-step "parallel" grid (both v7x TensorCores busy).
    B = 8     # batch_size per instance
    D = 16    # input_dim
    E = 8     # embed_dim
    N = 32    # number of independent FeatureAttention instances

    key = jax.random.PRNGKey(0)
    kx, kq, kbq, kk, kbk, kv, kbv = jax.random.split(key, 7)
    bound = 1.0 / jnp.sqrt(jnp.float32(D))   # PyTorch nn.Linear default init range

    x = jax.random.normal(kx, (N, B, D), dtype=jnp.float32)
    wq = jax.random.uniform(kq, (N, D, E), jnp.float32, -bound, bound)
    bq = jax.random.uniform(kbq, (N, E), jnp.float32, -bound, bound)
    wk = jax.random.uniform(kk, (N, D, E), jnp.float32, -bound, bound)
    bk = jax.random.uniform(kbk, (N, E), jnp.float32, -bound, bound)
    wv = jax.random.uniform(kv, (N, D, E), jnp.float32, -bound, bound)
    bv = jax.random.uniform(kbv, (N, E), jnp.float32, -bound, bound)

    # One-time parameter fusion / scale folding / block-diagonal packing
    # (the equivalent of module init).
    w_packed, b_packed = pack_params(wq, bq, wk, bk, wv, bv)

    out = jax.jit(feature_attention)(x, w_packed, b_packed)
    out = jax.block_until_ready(out)

    ref = jax.vmap(_reference_single)(x, wq, bq, wk, bk, wv, bv)
    assert out.shape == (N, B, E)
    # approx=True reciprocal in the softmax denominator allows ~1e-3-relative error.
    assert jnp.allclose(out, ref, atol=2e-3, rtol=2e-3), "mismatch vs JAX reference"

    print("KERNEL_OK")
</pallas_src>

<mosaic_0001>
module attributes {stable_mosaic.version = 11 : i64} {
  func.func @_feature_attention_kernel(%arg0: i32, %arg1: memref<1x8x256xf32, #tpu.memory_space<vmem>>, %arg2: memref<1x256x384xf32, #tpu.memory_space<vmem>>, %arg3: memref<1x1x384xf32, #tpu.memory_space<vmem>>, %arg4: memref<128x8xf32, #tpu.memory_space<vmem>>, %arg5: memref<128x128xf32, #tpu.memory_space<vmem>>, %arg6: memref<1x8x128xf32, #tpu.memory_space<vmem>>) attributes {dimension_semantics = [#tpu.dimension_semantics<parallel>], iteration_bounds = array<i64: 2>, scalar_prefetch = 0 : i64, scratch_operands = 0 : i64, tpu.core_type = #tpu.core_type<tc>, window_params = [{transform_indices = @transform_0, window_bounds = array<i64: 1, 8, 256>}, {transform_indices = @transform_1, window_bounds = array<i64: 1, 256, 384>}, {transform_indices = @transform_2, window_bounds = array<i64: 1, 1, 384>}, {pipeline_mode = #tpu.pipeline_mode<synchronous>, transform_indices = @transform_3, window_bounds = array<i64: 128, 8>}, {pipeline_mode = #tpu.pipeline_mode<synchronous>, transform_indices = @transform_4, window_bounds = array<i64: 128, 128>}, {transform_indices = @transform_5, window_bounds = array<i64: 1, 8, 128>}]} {
    %c0 = arith.constant 0 : index
    %c0_0 = arith.constant 0 : index
    %c0_1 = arith.constant 0 : index
    %0 = vector.load %arg1[%c0, %c0_0, %c0_1] : memref<1x8x256xf32, #tpu.memory_space<vmem>>, vector<1x8x256xf32>
    %1 = vector.shape_cast %0 : vector<1x8x256xf32> to vector<8x256xf32>
    %c0_2 = arith.constant 0 : index
    %c0_3 = arith.constant 0 : index
    %c0_4 = arith.constant 0 : index
    %2 = vector.load %arg2[%c0_2, %c0_3, %c0_4] : memref<1x256x384xf32, #tpu.memory_space<vmem>>, vector<1x256x384xf32>
    %3 = vector.shape_cast %2 : vector<1x256x384xf32> to vector<256x384xf32>
    %c0_5 = arith.constant 0 : index
    %c0_6 = arith.constant 0 : index
    %c0_7 = arith.constant 0 : index
    %4 = vector.load %arg3[%c0_5, %c0_6, %c0_7] : memref<1x1x384xf32, #tpu.memory_space<vmem>>, vector<1x1x384xf32>
    %5 = vector.shape_cast %4 : vector<1x1x384xf32> to vector<1x384xf32>
    %cst = arith.constant dense<0.000000e+00> : vector<8x384xf32>
    %6 = tpu.matmul %1, %3, %cst {dimension_numbers = #tpu.dot_dimension_numbers<[1], [0], [0], [1], [0, 0, 1, 1], [], []>} : vector<8x256xf32>, vector<256x384xf32>, vector<8x384xf32> -> vector<8x384xf32>
    %7 = vector.broadcast %5 : vector<1x384xf32> to vector<8x384xf32>
    %8 = arith.addf %6, %7 : vector<8x384xf32>
    %9 = vector.extract_strided_slice %8 {offsets = [0, 0], sizes = [8, 128], strides = [1, 1]} : vector<8x384xf32> to vector<8x128xf32>
    %10 = vector.extract_strided_slice %8 {offsets = [0, 128], sizes = [8, 128], strides = [1, 1]} : vector<8x384xf32> to vector<8x128xf32>
    %11 = vector.extract_strided_slice %8 {offsets = [0, 256], sizes = [8, 128], strides = [1, 1]} : vector<8x384xf32> to vector<8x128xf32>
    %c0_8 = arith.constant 0 : index
    %c0_9 = arith.constant 0 : index
    %12 = vector.load %arg4[%c0_8, %c0_9] : memref<128x8xf32, #tpu.memory_space<vmem>>, vector<128x8xf32>
    %c0_10 = arith.constant 0 : index
    %c0_11 = arith.constant 0 : index
    %13 = vector.load %arg5[%c0_10, %c0_11] : memref<128x128xf32, #tpu.memory_space<vmem>>, vector<128x128xf32>
    %cst_12 = arith.constant dense<0.000000e+00> : vector<128x128xf32>
    %14 = tpu.matmul %12, %10, %cst_12 {dimension_numbers = #tpu.dot_dimension_numbers<[1], [0], [0], [1], [0, 0, 1, 1], [], []>} : vector<128x8xf32>, vector<8x128xf32>, vector<128x128xf32> -> vector<128x128xf32>
    %15 = arith.mulf %14, %13 : vector<128x128xf32>
    %cst_13 = arith.constant dense<0.000000e+00> : vector<8x128xf32>
    %16 = tpu.matmul %9, %15, %cst_13 {dimension_numbers = #tpu.dot_dimension_numbers<[1], [1], [0], [0], [0, 0, 1, 0], [], []>} : vector<8x128xf32>, vector<128x128xf32>, vector<8x128xf32> -> vector<8x128xf32>
    %cst_14 = arith.constant dense<0xFF800000> : vector<8xf32>
    %17 = vector.multi_reduction <maximumf>, %16, %cst_14 [1] : vector<8x128xf32> to vector<8xf32>
    %18 = vector.shape_cast %17 : vector<8xf32> to vector<8x1xf32>
    %19 = vector.broadcast %18 : vector<8x1xf32> to vector<8x128xf32>
    %20 = arith.subf %16, %19 : vector<8x128xf32>
    %21 = math.exp %20 : vector<8x128xf32>
    %cst_15 = arith.constant dense<0.000000e+00> : vector<8x128xf32>
    %22 = tpu.matmul %21, %13, %cst_15 {dimension_numbers = #tpu.dot_dimension_numbers<[1], [0], [0], [1], [0, 0, 1, 1], [], []>} : vector<8x128xf32>, vector<128x128xf32>, vector<8x128xf32> -> vector<8x128xf32>
    %23 = tpu.reciprocal %22 {approx = true} : vector<8x128xf32> -> vector<8x128xf32>
    %24 = arith.mulf %21, %23 : vector<8x128xf32>
    %25 = arith.mulf %24, %11 : vector<8x128xf32>
    %c0_16 = arith.constant 0 : index
    %c0_17 = arith.constant 0 : index
    %c0_18 = arith.constant 0 : index
    %26 = vector.load %arg6[%c0_16, %c0_17, %c0_18] : memref<1x8x128xf32, #tpu.memory_space<vmem>>, vector<1x8x128xf32>
    %27 = vector.shape_cast %26 : vector<1x8x128xf32> to vector<8x128xf32>
    %28 = vector.shape_cast %25 : vector<8x128xf32> to vector<1x8x128xf32>
    tpu.vector_store %arg6[%c0_16, %c0_17, %c0_18], %28 {strides = array<i32>} : memref<1x8x128xf32, #tpu.memory_space<vmem>>, vector<1x8x128xf32>,
    return
  }
  func.func @transform_0(%arg0: i32) -> (i32, i32, i32) {
    %c0_i32 = arith.constant 0 : i32
    %c0_i32_0 = arith.constant 0 : i32
    %c0_i32_1 = arith.constant 0 : i32
    return %arg0, %c0_i32, %c0_i32_0 : i32, i32, i32
  }
  func.func @transform_1(%arg0: i32) -> (i32, i32, i32) {
    %c0_i32 = arith.constant 0 : i32
    %c0_i32_0 = arith.constant 0 : i32
    %c0_i32_1 = arith.constant 0 : i32
    return %arg0, %c0_i32, %c0_i32_0 : i32, i32, i32
  }
  func.func @transform_2(%arg0: i32) -> (i32, i32, i32) {
    %c0_i32 = arith.constant 0 : i32
    %c0_i32_0 = arith.constant 0 : i32
    %c0_i32_1 = arith.constant 0 : i32
    return %arg0, %c0_i32, %c0_i32_0 : i32, i32, i32
  }
  func.func @transform_3(%arg0: i32) -> (i32, i32) {
    %c0_i32 = arith.constant 0 : i32
    %c0_i32_0 = arith.constant 0 : i32
    %c0_i32_1 = arith.constant 0 : i32
    return %c0_i32, %c0_i32_0 : i32, i32
  }
  func.func @transform_4(%arg0: i32) -> (i32, i32) {
    %c0_i32 = arith.constant 0 : i32
    %c0_i32_0 = arith.constant 0 : i32
    %c0_i32_1 = arith.constant 0 : i32
    return %c0_i32, %c0_i32_0 : i32, i32
  }
  func.func @transform_5(%arg0: i32) -> (i32, i32, i32) {
    %c0_i32 = arith.constant 0 : i32
    %c0_i32_0 = arith.constant 0 : i32
    %c0_i32_1 = arith.constant 0 : i32
    return %arg0, %c0_i32, %c0_i32_0 : i32, i32, i32
  }
}

</mosaic_0001>

<bundles_post_ra>
// kernel: feature_attention.1
= control target key start
LH: loop header
LB: loop body
LE: loop exit
PB: predicated region body
PF: predicated region fallthrough
CT: control target
= control target key end

     0   :  { %10 = vsyncpa [#allocation3], 0  ;;  %s1888_s0 = inlined_call_operand.vmem [shape: f32[2,8,256], index: 0, kind: input, shape index: {}]   ;;  %s1889_s1 = inlined_call_operand.hbm [shape: f32[2,256,384], index: 1, kind: input, shape index: {}]   ;;  %s1890_s2 = inlined_call_operand.vmem [shape: f32[2,1,384], index: 2, kind: input, shape index: {}]   ;;  %s1891_s3 = inlined_call_operand.vmem [shape: f32[128,8], index: 3, kind: input, shape index: {}]   ;;  %s1892_s4 = inlined_call_operand.vmem [shape: f32[128,128], index: 4, kind: input, shape index: {}]   ;;  %s1893_s5 = inlined_call_operand.vmem [shape: f32[2,8,128], index: 5, kind: output, shape index: {}]  }
   0x1   :  { %12 = vsyncpa [#allocation3 + $0x1], 0  ;;  %s1523_s18 = smov 0   ;;  %s1525_s19 = smov 0  }
   0x2   :  { %s1527_s20 = smov 0   ;;  %s1529_s21 = smov 0  }
   0x3 LB: > { %s1542_s22 = sadd.s32 4294967295, %s1485_s21   ;;  %s1545_s23 = sadd.s32 1, %s1485_s21   ;;  %s1485_s21 = sphi %s1529_s21, %s1900_s21   ;;  %s1481_s20 = sphi %s1527_s20, %s1899_s20   ;;  %s1477_s19 = sphi %s1525_s19, %s1898_s19   ;;  %s1473_s18 = sphi %s1523_s18, %s1897_s18  }
   0x4   : > { %s48_s24 = ssub.s32 %s1485_s21, %s1545_s23  ;;  %s51_s25 = sadd.s32 1, %s1481_s20 }
   0x5   : > { %p49_p0 = scmp.eq.s32.totalorder %s48_s24, 0  ;;  %p58_p1 = scmp.ne.s32.totalorder %s1481_s20, %s1477_s19 }
   0x6   : > { %p59_p2 = scmp.eq.s32.totalorder %s1485_s21, 0  ;;  %p64_p3 = scmp.ne.s32.totalorder %s1477_s19, %s1473_s18 }
   0x7   : > { %s1555_s26 = scalar_select %p49_p0, %s1481_s20, %s51_s25  }
   0x8   : > { %p60_p4 = por %p59_p2, %p58_p1  ;;  %p65_p5 = scmp.eq.s32.totalorder %s1542_s22, 0 }
   0x9   : > { %p1379_p6 = scmp.lt.s32.totalorder %s1485_s21, 2  ;;  %s196_s28 = sand.u32 1, %s1481_s20  }
   0xa   : > { %p1559_p7 = por %p65_p5, %p64_p3  ;;  %s1369_s29 = smul.u32 768, %s196_s28 }
   0xb   : > { %s1370_s30 = smul.u32 12288, %s1485_s21  ;;  %p1565_p8 = pnand %p1379_p6, %p60_p4 }
   0xc   : > { %s200_s10 = scalar_lea.vmem [#allocation2], %s1369_s29  ;;  %s1577_s12 = scalar_lea.sflag [#allocation3], %s196_s28 }
   0xd   : > { %s1572_s9 = scalar_lea.hbm %s1889_s1, %s1370_s30  ;;  %s207_s11 = sshll.u32 %s200_s10, 4  ;;  %s1574_s11 = int_to_ptr.vmem [resolvable:$true] %s207_s11 }
   0xe   : > { %s1421_s13 = scalar_lea.hbm %s1572_s9, 12288  ;;  %p1423_p11 = pneg %p1565_p8 }
   0xf   : > { %p1422_p10 = scmp.ne.s32.totalorder %s1572_s9, %s1421_s13  ;;  %s1426_s16 = scalar_lea.hbm %s1889_s1, 24576 }
  0x10   : > { %p1427_p0 = scmp.lt.u32.totalorder %s1572_s9, %s1889_s1  ;;  %p1428_p1 = scmp.lt.u32.totalorder %s1426_s16, %s1421_s13 }
  0x11   : > { %p1424_p12 = pnand %p1423_p11, %p1422_p10  ;;  %p1430_p3 = scmp.lt.u32.totalorder %s1421_s13, %s1572_s9 }
  0x12   : > { %p1429_p2 = por %p1428_p1, %p1427_p0 }
  0x13   : > { %p1425_p13 = pneg %p1424_p12 }
  0x14   : > { %p1431_p4 = por %p1430_p3, %p1429_p2 }
  0x16   : > { %p1432_p5 = pnand %p1431_p4, %p1425_p13 }
  0x18   : > { %1435 = shalt.err (!%p1432_p5)
}
  0x19   : > { %s1436_s24 = scalar_lea.vmem %s1574_s11, 12288  ;;  %s1487_s25 = smov [#allocation2]  }
  0x1a   : > { %p1437_p6 = scmp.ne.s32.totalorder %s1574_s11, %s1436_s24  ;;  %s1441_s28 = sshll.u32 %s1487_s25, 4  ;;  %s1442_s28 = int_to_ptr.vmem [resolvable:$false] %s1441_s28 }
  0x1b   : > { %s1443_s29 = scalar_lea.vmem %s1442_s28, 24576  ;;  %p1444_p9 = scmp.lt.s32.totalorder %s1574_s11, %s1442_s28 }
  0x1c   : > { %p1439_p10 = pnand %p1437_p6, %p1423_p11  ;;  %p1445_p0 = scmp.lt.s32.totalorder %s1443_s29, %s1436_s24 }
  0x1e   : > { %p1440_p12 = pneg %p1439_p10  ;;  %p1446_p1 = por %p1445_p0, %p1444_p9 }
  0x20   : > { %p1447_p2 = pnand %p1446_p1, %p1440_p12 }
  0x22   : > { %1450 = shalt.err (!%p1447_p2)
}
  0x23   : > { %s1488_s30 = smov 384   ;;  %s1489_s7 = smov 24  }
  0x24   : > { %1378 = dma.hbm_to_vmem [thread:$0]  (!%p1565_p8), %s1572_s9, 12288, %s1574_s11, %s1577_s12, %s1488_s30, %s1488_s30, %s1489_s7  }
  0x25   : > { %p222_p11 = scmp.lt.s32.totalorder %s1485_s21, 3  ;;  %p1896_p13 = scmp.ge.s32.totalorder %s1485_s21, 1 }
  0x27   : > { %p223_p3 = pnand %p1896_p13, %p222_p11 }
  0x28   : > { %s228_s8 = sand.u32 (!%p223_p3), 1, %s1477_s19  }
  0x29   : > { %226 = sbr.rel (%p223_p3) target bundleno = 1210 (0x4ba), region = 40  ;;  %s229_s13 = scalar_lea.sflag (!%p223_p3), [#allocation3], %s228_s8 }
  0x2a   : > { %s1371_s10 = smul.u32 (!%p223_p3), 768, %s228_s8 }
  0x2c   : > { %s1609_s14 = scalar_lea.vmem (!%p223_p3), [#allocation2], %s1371_s10 }
  0x30   : > { %1468 = dma.done.wait (%p1559_p7), %s229_s13, 12288  }
  0x31   : > { %1470 = vsyncadd (%p1559_p7), %s229_s13, 4294955008  ;;  %v283_v0 = vld [vmem:[%s1609_s14 + $0x8] sm:$0xff]  ;;  %v286_v1 = vld [vmem:[%s1609_s14 + $0x20] sm:$0xff]  ;;  %p267_p7 = scmp.lt.s32.totalorder %s1542_s22, 1  ;;  %vm568_vm0 = vcmask 64512   ;;  %vm1491_vm1 = vmmov 0  }
  0x32   : > { %v282_v2 = vld [vmem:[%s1609_s14] sm:$0xff]  ;;  %v1225_v3 = vpack.c.bf16 %v286_v1, %v283_v0  ;;  %v285_v4 = vld [vmem:[%s1609_s14 + $0x18] sm:$0xff]  ;;  %v292_v6 = vld [vmem:[%s1609_s14 + $0x50] sm:$0xff] }
  0x33   : > { %v289_v5 = vld [vmem:[%s1609_s14 + $0x38] sm:$0xff]  ;;  %v1227_v7 = vpack.c.bf16 %v285_v4, %v282_v2  ;;  %v288_v9 = vld [vmem:[%s1609_s14 + $0x30] sm:$0xff]  ;;  %v291_v10 = vld [vmem:[%s1609_s14 + $0x48] sm:$0xff]  ;;  %s1902_s22 = smov (!%p267_p7, %s1542_s22), 1 }
  0x34   : > { %v1229_v8 = vpack.c.bf16 %v292_v6, %v289_v5  ;;  %v295_v11 = vld [vmem:[%s1609_s14 + $0x68] sm:$0xff]  ;;  %1226 = vmatprep.subr.bf16.mxu0 %v1225_v3  ;;  %v298_v12 = vld [vmem:[%s1609_s14 + $0x80] sm:$0xff]  ;;  %v1231_v13 = vpack.c.bf16 %v291_v10, %v288_v9  ;;  %v297_v16 = vld [vmem:[%s1609_s14 + $0x78] sm:$0xff]  ;;  %s1042_s21 = sshll.u32 %s1902_s22, 4  ;;  %s1372_s15 = smul.u32 3, %s1902_s22 }
  0x35   : > { %1228 = vmatpush1.bf16.msra.mxu0 %v1227_v7  ;;  %v1233_v14 = vpack.c.bf16 %v298_v12, %v295_v11  ;;  %v294_v15 = vld [vmem:[%s1609_s14 + $0x60] sm:$0xff]  ;;  %v301_v17 = vld [vmem:[%s1609_s14 + $0x98] sm:$0xff]  ;;  %v304_v18 = vld [vmem:[%s1609_s14 + $0xb0] sm:$0xff]  ;;  %s1649_s9 = scalar_lea.vmem %s1888_s0, %s1042_s21  ;;  %s1023_s28 = sshll.u32 %s1902_s22, 3 }
  0x36   : > { %1230 = vmatprep.subr.bf16.mxu0 %v1229_v8  ;;  %v1235_v19 = vpack.c.bf16 %v297_v16, %v294_v15  ;;  %v1237_v20 = vpack.c.bf16 %v304_v18, %v301_v17  ;;  %v300_v21 = vld [vmem:[%s1609_s14 + $0x90] sm:$0xff]  ;;  %v303_v22 = vld [vmem:[%s1609_s14 + $0xa8] sm:$0xff]  ;;  %v310_v24 = vld [vmem:[%s1609_s14 + $0xe0] sm:$0xff]  ;;  %s275_s18 = scalar_lea.vmem %s1890_s2, %s1372_s15  ;;  %s279_s7 = scalar_lea.vmem %s1893_s5, %s1023_s28 }
  0x37   : > { %v307_v23 = vld [vmem:[%s1609_s14 + $0xc8] sm:$0xff]  ;;  %v1239_v25 = vpack.c.bf16 %v303_v22, %v300_v21  ;;  %v306_v27 = vld [vmem:[%s1609_s14 + $0xc0] sm:$0xff]  ;;  %v309_v28 = vld [vmem:[%s1609_s14 + $0xd8] sm:$0xff] }
  0x38   : > { %v1241_v26 = vpack.c.bf16 %v310_v24, %v307_v23  ;;  %v313_v29 = vld [vmem:[%s1609_s14 + $0xf8] sm:$0xff]  ;;  %v316_v30 = vld [vmem:[%s1609_s14 + $0x110] sm:$0xff]  ;;  %v1243_v31 = vpack.c.bf16 %v309_v28, %v306_v27  ;;  %v315_v34 = vld [vmem:[%s1609_s14 + $0x108] sm:$0xff] }
  0x39   : > { %1232 = vmatpush1.bf16.msra.mxu0 %v1231_v13  ;;  %v1245_v32 = vpack.c.bf16 %v316_v30, %v313_v29  ;;  %v312_v33 = vld [vmem:[%s1609_s14 + $0xf0] sm:$0xff]  ;;  %v319_v35 = vld [vmem:[%s1609_s14 + $0x128] sm:$0xff]  ;;  %v322_v36 = vld [vmem:[%s1609_s14 + $0x140] sm:$0xff] }
  0x3a   : > { %1234 = vmatprep.subr.bf16.mxu0 %v1233_v14  ;;  %v1247_v37 = vpack.c.bf16 %v315_v34, %v312_v33  ;;  %v318_v38 = vld [vmem:[%s1609_s14 + $0x120] sm:$0xff]  ;;  %v321_v39 = vld [vmem:[%s1609_s14 + $0x138] sm:$0xff]  ;;  %v1249_v40 = vpack.c.bf16 %v322_v36, %v319_v35  ;;  %v328_v42 = vld [vmem:[%s1609_s14 + $0x170] sm:$0xff] }
  0x3b   : > { %v325_v41 = vld [vmem:[%s1609_s14 + $0x158] sm:$0xff]  ;;  %v281_v43 = vld [vmem:[%s1649_s9 + $0x8] sm:$0xff]  ;;  %v332_v44 = vld [vmem:[%s1609_s14 + $0x190] sm:$0xff]  ;;  %v1251_v51 = vpack.c.bf16 %v321_v39, %v318_v38 }
  0x3c   : > { %459 = vmatprep.mubr.f32.mxu0 %v281_v43  ;;  %v335_v45 = vld [vmem:[%s1609_s14 + $0x1a8] sm:$0xff]  ;;  %v284_v46 = vld [vmem:[%s1609_s14 + $0x10] sm:$0xff]  ;;  %530 = vmatprep.mubr.f32.mxu1 %v281_v43  ;;  %v338_v49 = vld [vmem:[%s1609_s14 + $0x1c0] sm:$0xff]  ;;  %v1253_v57 = vpack.c.bf16 %v328_v42, %v325_v41 }
  0x3d   : > { %1236 = vmatpush1.bf16.msra.mxu0 %v1235_v19  ;;  %v1289_v47 = vpack.c.bf16 %v335_v45, %v332_v44  ;;  %v287_v48 = vld [vmem:[%s1609_s14 + $0x28] sm:$0xff]  ;;  %v341_v50 = vld [vmem:[%s1609_s14 + $0x1d8] sm:$0xff]  ;;  %v290_v54 = vld [vmem:[%s1609_s14 + $0x40] sm:$0xff] }
  0x3e   : > { %1238 = vmatprep.subr.bf16.mxu0 %v1237_v20  ;;  %v1291_v52 = vpack.c.bf16 %v287_v48, %v284_v46  ;;  %v1293_v53 = vpack.c.bf16 %v341_v50, %v338_v49  ;;  %v293_v55 = vld [vmem:[%s1609_s14 + $0x58] sm:$0xff]  ;;  %v344_v56 = vld [vmem:[%s1609_s14 + $0x1f0] sm:$0xff]  ;;  %v327_v59 = vld [vmem:[%s1609_s14 + $0x168] sm:$0xff] }
  0x3f   : > { %v324_v58 = vld [vmem:[%s1609_s14 + $0x150] sm:$0xff]  ;;  %1290 = vmatprep.subr.bf16.mxu1 %v1289_v47  ;;  %v347_v60 = vld [vmem:[%s1609_s14 + $0x208] sm:$0xff]  ;;  %v334_v62 = vld [vmem:[%s1609_s14 + $0x1a0] sm:$0xff]  ;;  %v1295_v63 = vpack.c.bf16 %v293_v55, %v290_v54 }
  0x40   : > { %v331_v61 = vld [vmem:[%s1609_s14 + $0x188] sm:$0xff]  ;;  %1292 = vmatpush3.bf16.msra.mxu1 %v1291_v52  ;;  %v1297_v0 = vpack.c.bf16 %v347_v60, %v344_v56  ;;  %v296_v1 = vld [vmem:[%s1609_s14 + $0x70] sm:$0xff]  ;;  %v1255_v3 = vpack.c.bf16 %v327_v59, %v324_v58  ;;  %v350_v4 = vld [vmem:[%s1609_s14 + $0x220] sm:$0xff] }
  0x41   : > { %1240 = vmatpush1.bf16.msra.mxu0 %v1239_v25  ;;  %1294 = vmatprep.subr.bf16.mxu1 %v1293_v53  ;;  %v299_v2 = vld [vmem:[%s1609_s14 + $0x88] sm:$0xff]  ;;  %v353_v5 = vld [vmem:[%s1609_s14 + $0x238] sm:$0xff]  ;;  %v1257_v6 = vpack.c.bf16 %v334_v62, %v331_v61  ;;  %v330_v7 = vld [vmem:[%s1609_s14 + $0x180] sm:$0xff] }
  0x42   : > { %1242 = vmatprep.subr.bf16.mxu0 %v1241_v26  ;;  %v333_v8 = vld [vmem:[%s1609_s14 + $0x198] sm:$0xff]  ;;  %v340_v10 = vld [vmem:[%s1609_s14 + $0x1d0] sm:$0xff]  ;;  %v1299_v11 = vpack.c.bf16 %v299_v2, %v296_v1  ;;  %v1301_v12 = vpack.c.bf16 %v353_v5, %v350_v4  ;;  %v302_v13 = vld [vmem:[%s1609_s14 + $0xa0] sm:$0xff] }
  0x43   : > { %v337_v9 = vld [vmem:[%s1609_s14 + $0x1b8] sm:$0xff]  ;;  %v1259_v15 = vpack.c.bf16 %v333_v8, %v330_v7  ;;  %v356_v16 = vld [vmem:[%s1609_s14 + $0x250] sm:$0xff]  ;;  %v359_v17 = vld [vmem:[%s1609_s14 + $0x268] sm:$0xff] }
  0x44   : > { %1296 = vmatpush3.bf16.msra.mxu1 %v1295_v63  ;;  %v305_v14 = vld [vmem:[%s1609_s14 + $0xb8] sm:$0xff]  ;;  %v1261_v18 = vpack.c.bf16 %v340_v10, %v337_v9  ;;  %v336_v19 = vld [vmem:[%s1609_s14 + $0x1b0] sm:$0xff]  ;;  %v339_v20 = vld [vmem:[%s1609_s14 + $0x1c8] sm:$0xff]  ;;  %v1305_v24 = vpack.c.bf16 %v359_v17, %v356_v16 }
  0x45   : > { %1244 = vmatpush1.bf16.msra.mxu0 %v1243_v31  ;;  %1298 = vmatprep.subr.bf16.mxu1 %v1297_v0  ;;  %v343_v21 = vld [vmem:[%s1609_s14 + $0x1e8] sm:$0xff]  ;;  %v346_v22 = vld [vmem:[%s1609_s14 + $0x200] sm:$0xff]  ;;  %v1303_v23 = vpack.c.bf16 %v305_v14, %v302_v13  ;;  %v308_v25 = vld [vmem:[%s1609_s14 + $0xd0] sm:$0xff]  ;;  %v1263_v27 = vpack.c.bf16 %v339_v20, %v336_v19  ;;  %v380_v19 = vlaneseq }
  0x46   : > { %1246 = vmatprep.subr.bf16.mxu0 %v1245_v32  ;;  %v311_v26 = vld [vmem:[%s1609_s14 + $0xe8] sm:$0xff]  ;;  %v362_v28 = vld [vmem:[%s1609_s14 + $0x280] sm:$0xff]  ;;  %v365_v29 = vld [vmem:[%s1609_s14 + $0x298] sm:$0xff]  ;;  %v1265_v30 = vpack.c.bf16 %v346_v22, %v343_v21 }
  0x47   : > { %v342_v31 = vld [vmem:[%s1609_s14 + $0x1e0] sm:$0xff]  ;;  %v345_v32 = vld [vmem:[%s1609_s14 + $0x1f8] sm:$0xff]  ;;  %v352_v34 = vld [vmem:[%s1609_s14 + $0x230] sm:$0xff]  ;;  %v1307_v35 = vpack.c.bf16 %v311_v26, %v308_v25  ;;  %v1309_v36 = vpack.c.bf16 %v365_v29, %v362_v28  ;;  %v1728_v20 = vshrl.u32 %v380_v19, 7 }
  0x48   : > { %1300 = vmatpush3.bf16.msra.mxu1 %v1299_v11  ;;  %v349_v33 = vld [vmem:[%s1609_s14 + $0x218] sm:$0xff]  ;;  %v1267_v39 = vpack.c.bf16 %v345_v32, %v342_v31  ;;  %v371_v41 = vld [vmem:[%s1609_s14 + $0x2c8] sm:$0xff]  ;;  %v348_v43 = vld [vmem:[%s1609_s14 + $0x210] sm:$0xff] }
  0x49   : > { %1248 = vmatpush1.bf16.msra.mxu0 %v1247_v37  ;;  %1302 = vmatprep.subr.bf16.mxu1 %v1301_v12  ;;  %v314_v37 = vld [vmem:[%s1609_s14 + $0x100] sm:$0xff]  ;;  %v317_v38 = vld [vmem:[%s1609_s14 + $0x118] sm:$0xff]  ;;  %v1269_v42 = vpack.c.bf16 %v352_v34, %v349_v33  ;;  %v351_v44 = vld [vmem:[%s1609_s14 + $0x228] sm:$0xff] }
  0x4a   : > { %1250 = vmatprep.subr.bf16.mxu0 %v1249_v40  ;;  %v368_v40 = vld [vmem:[%s1609_s14 + $0x2b0] sm:$0xff]  ;;  %v355_v45 = vld [vmem:[%s1609_s14 + $0x248] sm:$0xff]  ;;  %v358_v46 = vld [vmem:[%s1609_s14 + $0x260] sm:$0xff]  ;;  %v1311_v47 = vpack.c.bf16 %v317_v38, %v314_v37 }
  0x4b   : > { %v1313_v48 = vpack.c.bf16 %v371_v41, %v368_v40  ;;  %v320_v49 = vld [vmem:[%s1609_s14 + $0x130] sm:$0xff]  ;;  %v323_v50 = vld [vmem:[%s1609_s14 + $0x148] sm:$0xff]  ;;  %v374_v52 = vld [vmem:[%s1609_s14 + $0x2e0] sm:$0xff]  ;;  %v1273_v54 = vpack.c.bf16 %v358_v46, %v355_v45 }
  0x4c   : > { %1304 = vmatpush3.bf16.msra.mxu1 %v1303_v23  ;;  %v377_v53 = vld [vmem:[%s1609_s14 + $0x2f8] sm:$0xff]  ;;  %v354_v55 = vld [vmem:[%s1609_s14 + $0x240] sm:$0xff]  ;;  %v364_v58 = vld [vmem:[%s1609_s14 + $0x290] sm:$0xff]  ;;  %v1315_v59 = vpack.c.bf16 %v323_v50, %v320_v49 }
  0x4d   : > { %1252 = vmatpush1.bf16.msra.mxu0 %v1251_v51  ;;  %1306 = vmatprep.subr.bf16.mxu1 %v1305_v24  ;;  %v1271_v51 = vpack.c.bf16 %v351_v44, %v348_v43  ;;  %v357_v56 = vld [vmem:[%s1609_s14 + $0x258] sm:$0xff]  ;;  %v1317_v60 = vpack.c.bf16 %v377_v53, %v374_v52  ;;  %v326_v61 = vld [vmem:[%s1609_s14 + $0x160] sm:$0xff]  ;;  %v360_v1 = vld [vmem:[%s1609_s14 + $0x270] sm:$0xff]  ;;  %v386_v24 = vsub.s32 1, %v1728_v20 }
  0x4e   : > { %1254 = vmatprep.subr.bf16.mxu0 %v1253_v57  ;;  %v361_v57 = vld [vmem:[%s1609_s14 + $0x278] sm:$0xff]  ;;  %v1275_v63 = vpack.c.bf16 %v357_v56, %v354_v55  ;;  %v363_v2 = vld [vmem:[%s1609_s14 + $0x288] sm:$0xff]  ;;  %v370_v4 = vld [vmem:[%s1609_s14 + $0x2c0] sm:$0xff] }
  0x4f   : > { %v329_v62 = vld [vmem:[%s1609_s14 + $0x178] sm:$0xff]  ;;  %v1277_v0 = vpack.c.bf16 %v364_v58, %v361_v57  ;;  %v366_v8 = vld [vmem:[%s1609_s14 + $0x2a0] sm:$0xff]  ;;  %v376_v11 = vld [vmem:[%s1609_s14 + $0x2f0] sm:$0xff] }
  0x50   : > { %1308 = vmatpush3.bf16.msra.mxu1 %v1307_v35  ;;  %v1319_v5 = vpack.c.bf16 %v329_v62, %v326_v61  ;;  %v369_v9 = vld [vmem:[%s1609_s14 + $0x2b8] sm:$0xff]  ;;  %v280_v13 = vld [vmem:[%s1649_s9] sm:$0xff]  ;;  %v375_v16 = vld [vmem:[%s1609_s14 + $0x2e8] sm:$0xff] }
  0x51   : > { %1256 = vmatpush1.bf16.msra.mxu0 %v1255_v3  ;;  %1310 = vmatprep.subr.bf16.mxu1 %v1309_v36  ;;  %v367_v3 = vld [vmem:[%s1609_s14 + $0x2a8] sm:$0xff]  ;;  %v373_v10 = vld [vmem:[%s1609_s14 + $0x2d8] sm:$0xff]  ;;  %v1283_v12 = vpack.c.bf16 %v369_v9, %v366_v8  ;;  %v1736_v25 = vld [vmem:[%s275_s18] sm:$0x7] }
  0x52   : > { %1258 = vmatprep.subr.bf16.mxu0 %v1257_v6  ;;  %v1279_v6 = vpack.c.bf16 %v363_v2, %v360_v1  ;;  %v1281_v7 = vpack.c.bf16 %v370_v4, %v367_v3  ;;  %v1285_v14 = vpack.c.bf16 %v376_v11, %v373_v10  ;;  %v387_v26 = vrot.slane %v1736_v25, %v386_v24  ;;  %v538_v31 = vld [vmem:[%s1891_s3 + $0x10] sm:$0xff]  ;;  %v539_v32 = vld [vmem:[%s1891_s3 + $0x18] sm:$0xff]  ;;  %v540_v33 = vld [vmem:[%s1891_s3 + $0x20] sm:$0xff] }
  0x53   : > { %v541_v34 = vld [vmem:[%s1891_s3 + $0x28] sm:$0xff]  ;;  %v542_v35 = vld [vmem:[%s1891_s3 + $0x30] sm:$0xff]  ;;  %v543_v36 = vld [vmem:[%s1891_s3 + $0x38] sm:$0xff] }
  0x54   : > { %1312 = vmatpush3.bf16.msra.mxu1 %v1311_v47  ;;  %v544_v37 = vld [vmem:[%s1891_s3 + $0x40] sm:$0xff]  ;;  %v545_v38 = vld [vmem:[%s1891_s3 + $0x48] sm:$0xff]  ;;  %v547_v40 = vld [vmem:[%s1891_s3 + $0x58] sm:$0xff] }
  0x55   : > { %1260 = vmatpush1.bf16.msra.mxu0 %v1259_v15  ;;  %1314 = vmatprep.subr.bf16.mxu1 %v1313_v48  ;;  %v372_v15 = vld [vmem:[%s1609_s14 + $0x2d0] sm:$0xff]  ;;  %v548_v41 = vld [vmem:[%s1891_s3 + $0x60] sm:$0xff]  ;;  %v551_v44 = vld [vmem:[%s1891_s3 + $0x78] sm:$0xff]  ;;  %v1490_v48 = vmov 0.0|0.0  }
  0x56   : > { %1262 = vmatprep.subr.bf16.mxu0 %v1261_v18  ;;  %v1287_v17 = vpack.c.bf16 %v375_v16, %v372_v15  ;;  %v536_v18 = vld [vmem:[%s1891_s3] sm:$0xff]  ;;  %v550_v43 = vld [vmem:[%s1891_s3 + $0x70] sm:$0xff]  ;;  %v553_v45 = vld [vmem:[%s1892_s4 + $0x8] sm:$0xff] }
  0x57   : > { %v552_v46 = vld [vmem:[%s1892_s4] sm:$0xff]  ;;  %v555_v49 = vld [vmem:[%s1892_s4 + $0x18] sm:$0xff]  ;;  %v554_v50 = vld [vmem:[%s1892_s4 + $0x10] sm:$0xff] }
  0x58   : > { %1316 = vmatpush3.bf16.msra.mxu1 %v1315_v59  ;;  %v1346_v47 = vpack.c.bf16 %v553_v45, %v552_v46  ;;  %v557_v52 = vld [vmem:[%s1892_s4 + $0x28] sm:$0xff]  ;;  %v556_v53 = vld [vmem:[%s1892_s4 + $0x20] sm:$0xff]  ;;  %v559_v55 = vld [vmem:[%s1892_s4 + $0x38] sm:$0xff] }
  0x59   : > { %1264 = vmatpush1.bf16.msra.mxu0 %v1263_v27  ;;  %1318 = vmatprep.subr.bf16.mxu1 %v1317_v60  ;;  %v558_v56 = vld [vmem:[%s1892_s4 + $0x30] sm:$0xff]  ;;  %v561_v58 = vld [vmem:[%s1892_s4 + $0x48] sm:$0xff]  ;;  %v560_v59 = vld [vmem:[%s1892_s4 + $0x40] sm:$0xff] }
  0x5a   : > { %1266 = vmatprep.subr.bf16.mxu0 %v1265_v30  ;;  %v537_v30 = vld [vmem:[%s1891_s3 + $0x8] sm:$0xff]  ;;  %v1355_v57 = vpack.c.bf16 %v559_v55, %v558_v56  ;;  %v1358_v60 = vpack.c.bf16 %v561_v58, %v560_v59  ;;  %v563_v61 = vld [vmem:[%s1892_s4 + $0x58] sm:$0xff]  ;;  %v562_v62 = vld [vmem:[%s1892_s4 + $0x50] sm:$0xff] }
  0x5b   : > { %v564_v1 = vld [vmem:[%s1892_s4 + $0x60] sm:$0xff]  ;;  %v567_v3 = vld [vmem:[%s1892_s4 + $0x78] sm:$0xff]  ;;  %v566_v4 = vld [vmem:[%s1892_s4 + $0x70] sm:$0xff] }
  0x5c   : > { %1320 = vmatpush3.bf16.msra.mxu1 %v1319_v5  ;;  %v1367_v5 = vpack.c.bf16 %v567_v3, %v566_v4 }
  0x5d   : > { %1268 = vmatpush1.bf16.msra.mxu0 %v1267_v39  ;;  %v546_v39 = vld [vmem:[%s1891_s3 + $0x50] sm:$0xff] }
  0x5e   : > { %1270 = vmatprep.subr.bf16.mxu0 %v1269_v42  ;;  %v549_v42 = vld [vmem:[%s1891_s3 + $0x68] sm:$0xff] }
  0x5f   : > { %531 = vmatmul.mubr.f32.vlgmr.msra.gmra.mrb[0].mxu1 %v280_v13 }
  0x60   : > { %1131 = vmatprep.mubr.msk.f32.mxu1 %vm568_vm0, %v536_v18 }
  0x61   : > { %1272 = vmatpush1.bf16.msra.mxu0 %v1271_v51  ;;  %v1349_v51 = vpack.c.bf16 %v555_v49, %v554_v50 }
  0x62   : > { %1274 = vmatprep.subr.bf16.mxu0 %v1273_v54  ;;  %v1352_v54 = vpack.c.bf16 %v557_v52, %v556_v53 }
  0x65   : > { %1276 = vmatpush1.bf16.msra.mxu0 %v1275_v63  ;;  %v1361_v63 = vpack.c.bf16 %v563_v61, %v562_v62 }
  0x66   : > { %1278 = vmatprep.subr.bf16.mxu0 %v1277_v0  ;;  %v565_v0 = vld [vmem:[%s1892_s4 + $0x68] sm:$0xff] }
  0x67   : > { %v1364_v2 = vpack.c.bf16 %v565_v0, %v564_v1 }
  0x69   : > { %1280 = vmatpush1.bf16.msra.mxu0 %v1279_v6  ;;  %v1492_v6 = vmov 0.0  }
  0x6a   : > { %1282 = vmatprep.subr.bf16.mxu0 %v1281_v7 }
  0x6d   : > { %1284 = vmatpush1.bf16.msra.mxu0 %v1283_v12 }
  0x6e   : > { %1286 = vmatprep.subr.bf16.mxu0 %v1285_v14 }
  0x71   : > { %1288 = vmatpush1.bf16.msra.mxu0 %v1287_v17 }
  0x72   : > { %1345 = vmatprep.subr.bf16.mxu0 %v1490_v48 }
  0x74   : > { %460 = vmatmul.mubr.f32.vlgmr.msra.gmra.mrb[0].mxu0 %v280_v13 }
  0x75   : > { %1347 = vmatpush3.bf16.msra.mxu0 %v1346_v47  ;;  %1222 = vmatprep.mubr.msk.f32.mxu0 %vm1491_vm1, %v1492_v6 }
  0x76   : > { %1348 = vmatprep.subr.bf16.mxu0 %v1490_v48 }
  0x79   : > { %1350 = vmatpush3.bf16.msra.mxu0 %v1349_v51 }
  0x7a   : > { %1351 = vmatprep.subr.bf16.mxu0 %v1490_v48 }
  0x7d   : > { %1353 = vmatpush3.bf16.msra.mxu0 %v1352_v54 }
  0x7e   : > { %1354 = vmatprep.subr.bf16.mxu0 %v1490_v48 }
  0x81   : > { %1356 = vmatpush3.bf16.msra.mxu0 %v1355_v57 }
  0x82   : > { %1357 = vmatprep.subr.bf16.mxu0 %v1490_v48 }
  0x85   : > { %1359 = vmatpush3.bf16.msra.mxu0 %v1358_v60 }
  0x86   : > { %1360 = vmatprep.subr.bf16.mxu0 %v1490_v48 }
  0x89   : > { %1362 = vmatpush3.bf16.msra.mxu0 %v1361_v63 }
  0x8a   : > { %1363 = vmatprep.subr.bf16.mxu0 %v1490_v48 }
  0x8d   : > { %1365 = vmatpush3.bf16.msra.mxu0 %v1364_v2 }
  0x8e   : > { %1366 = vmatprep.subr.bf16.mxu0 %v1490_v48 }
  0x91   : > { %1368 = vmatpush3.bf16.msra.mxu0 %v1367_v5 }
 0x132   : > { %v1075_v21 = vpop.f32.mrb[0].mxu1 }
 0x133   : > { %v1076_v22 = vpop.f32.mrb[1].mxu1 }
 0x134   : > { %v1733_v23 = vadd.f32 %v1076_v22, %v1075_v21 }
 0x147   : > { %v1739_v27 = vpop.f32.mrb[0].mxu0 }
 0x148   : > { %v463_v28 = vpop.f32.mrb[1].mxu0 }
 0x149   : > { %v464_v29 = vadd.f32 %v463_v28, %v387_v26 }
 0x14b   : > { %1129 = vmatprep.subr.mxu1 %v464_v29 }
 0x14c   : > { %1130 = vmatpush3.msra.mxu1 %v464_v29 }
 0x14d   : > { %1132 = vmatmul.mubr.msk.f32.vlgmr.msra.gmra.mrb[2].mxu1 %vm568_vm0, %v537_v30  ;;  %1321 = vmatprep.subr.bf16.mxu1 %v1490_v48 }
 0x14e   : > { %1134 = vmatprep.mubr.msk.f32.mxu1 %vm568_vm0, %v538_v31 }
 0x151   : > { %1135 = vmatmul.mubr.msk.f32.gmra.mrb[4].mxu1 %vm568_vm0, %v539_v32 }
 0x152   : > { %1137 = vmatprep.mubr.msk.f32.mxu1 %vm568_vm0, %v540_v33 }
 0x155   : > { %1138 = vmatmul.mubr.msk.f32.gmra.mrb[6].mxu1 %vm568_vm0, %v541_v34 }
 0x156   : > { %1140 = vmatprep.mubr.msk.f32.mxu1 %vm568_vm0, %v542_v35 }
 0x159   : > { %1141 = vmatmul.mubr.msk.f32.gmra.mrb[8].mxu1 %vm568_vm0, %v543_v36 }
 0x15a   : > { %1143 = vmatprep.mubr.msk.f32.mxu1 %vm568_vm0, %v544_v37 }
 0x15d   : > { %1144 = vmatmul.mubr.msk.f32.gmra.mrb[10].mxu1 %vm568_vm0, %v545_v38 }
 0x15e   : > { %1146 = vmatprep.mubr.msk.f32.mxu1 %vm568_vm0, %v546_v39 }
 0x161   : > { %1147 = vmatmul.mubr.msk.f32.gmra.mrb[12].mxu1 %vm568_vm0, %v547_v40 }
 0x162   : > { %1149 = vmatprep.mubr.msk.f32.mxu1 %vm568_vm0, %v548_v41 }
 0x165   : > { %1150 = vmatmul.mubr.msk.f32.gmra.mrb[14].mxu1 %vm568_vm0, %v549_v42 }
 0x166   : > { %1152 = vmatprep.mubr.msk.f32.mxu1 %vm568_vm0, %v550_v43 }
 0x169   : > { %1153 = vmatmul.mubr.msk.f32.gmra.mrb[16].mxu1 %vm568_vm0, %v551_v44 }
 0x16a   : > { %1187 = vmatprep.mubr.msk.f32.mxu1 %vm1491_vm1, %v1492_v6 }
 0x220   : > { %v1133_v7 = vpop.f32.mrb[2].mxu1 }
 0x221   : > { %v763_v8 = vmul.f32 %v1133_v7, %v553_v45  ;;  %v683_v9 = vpop.f32.mrb[3].mxu1 }
 0x222   : > { %v762_v10 = vmul.f32 %v683_v9, %v552_v46 }
 0x224   : > { %v1322_v11 = vpack.c.bf16 %v763_v8, %v762_v10  ;;  %v1136_v12 = vpop.f32.mrb[4].mxu1 }
 0x225   : > { %v765_v13 = vmul.f32 %v1136_v12, %v555_v49  ;;  %v693_v14 = vpop.f32.mrb[5].mxu1 }
 0x226   : > { %1323 = vmatpush3.bf16.xpose.msra.mxu1 %v1322_v11  ;;  %v764_v15 = vmul.f32 %v693_v14, %v554_v50 }
 0x227   : > { %1324 = vmatprep.subr.bf16.mxu1 %v1490_v48 }
 0x228   : > { %v1325_v16 = vpack.c.bf16 %v765_v13, %v764_v15  ;;  %v1139_v17 = vpop.f32.mrb[6].mxu1 }
 0x229   : > { %v767_v18 = vmul.f32 %v1139_v17, %v557_v52  ;;  %v703_v19 = vpop.f32.mrb[7].mxu1  ;;  %v382_v52 = vsub.s32 0, %v1728_v20 }
 0x22a   : > { %v766_v21 = vmul.f32 %v703_v19, %v556_v53 }
 0x22b   : > { %v383_v53 = vrot.slane %v1736_v25, %v382_v52 }
 0x22c   : > { %v1328_v22 = vpack.c.bf16 %v767_v18, %v766_v21  ;;  %v1142_v24 = vpop.f32.mrb[8].mxu1 }
 0x22d   : > { %v769_v26 = vmul.f32 %v1142_v24, %v559_v55  ;;  %v713_v28 = vpop.f32.mrb[9].mxu1  ;;  %v462_v54 = vadd.f32 %v1739_v27, %v383_v53 }
 0x22e   : > { %1326 = vmatpush3.bf16.xpose.msra.mxu1 %v1325_v16  ;;  %v768_v29 = vmul.f32 %v713_v28, %v558_v56 }
 0x22f   : > { %1327 = vmatprep.subr.bf16.mxu1 %v1490_v48 }
 0x230   : > { %v1331_v30 = vpack.c.bf16 %v769_v26, %v768_v29  ;;  %v1145_v31 = vpop.f32.mrb[10].mxu1 }
 0x231   : > { %v771_v32 = vmul.f32 %v1145_v31, %v561_v58  ;;  %v723_v33 = vpop.f32.mrb[11].mxu1 }
 0x232   : > { %v770_v34 = vmul.f32 %v723_v33, %v560_v59 }
 0x234   : > { %v1334_v35 = vpack.c.bf16 %v771_v32, %v770_v34  ;;  %v1148_v36 = vpop.f32.mrb[12].mxu1 }
 0x235   : > { %v773_v37 = vmul.f32 %v1148_v36, %v563_v61  ;;  %v733_v38 = vpop.f32.mrb[13].mxu1 }
 0x236   : > { %1329 = vmatpush3.bf16.xpose.msra.mxu1 %v1328_v22  ;;  %v772_v39 = vmul.f32 %v733_v38, %v562_v62  ;;  %v390_v62 = vsub.s32 2, %v1728_v20 }
 0x237   : > { %1330 = vmatprep.subr.bf16.mxu1 %v1490_v48 }
 0x238   : > { %v1337_v40 = vpack.c.bf16 %v773_v37, %v772_v39  ;;  %v1151_v41 = vpop.f32.mrb[14].mxu1  ;;  %v391_v63 = vrot.slane %v1736_v25, %v390_v62 }
 0x239   : > { %v775_v42 = vmul.f32 %v1151_v41, %v565_v0  ;;  %v743_v43 = vpop.f32.mrb[15].mxu1 }
 0x23a   : > { %v774_v44 = vmul.f32 %v743_v43, %v564_v1  ;;  %v533_v0 = vadd.f32 %v1733_v23, %v391_v63 }
 0x23c   : > { %v1340_v45 = vpack.c.bf16 %v775_v42, %v774_v44  ;;  %v1154_v46 = vpop.f32.mrb[16].mxu1 }
 0x23d   : > { %v777_v47 = vmul.f32 %v1154_v46, %v567_v3  ;;  %v753_v49 = vpop.f32.mrb[17].mxu1 }
 0x23e   : > { %1332 = vmatpush3.bf16.xpose.msra.mxu1 %v1331_v30  ;;  %v776_v50 = vmul.f32 %v753_v49, %v566_v4 }
 0x23f   : > { %1333 = vmatprep.subr.bf16.mxu1 %v1490_v48 }
 0x240   : > { %v1343_v51 = vpack.c.bf16 %v777_v47, %v776_v50 }
 0x246   : > { %1335 = vmatpush3.bf16.xpose.msra.mxu1 %v1334_v35 }
 0x247   : > { %1336 = vmatprep.subr.bf16.mxu1 %v1490_v48 }
 0x24e   : > { %1338 = vmatpush3.bf16.xpose.msra.mxu1 %v1337_v40 }
 0x24f   : > { %1339 = vmatprep.subr.bf16.mxu1 %v1490_v48 }
 0x256   : > { %1341 = vmatpush3.bf16.xpose.msra.mxu1 %v1340_v45 }
 0x257   : > { %1342 = vmatprep.subr.bf16.mxu1 %v1490_v48 }
 0x25e   : > { %1344 = vmatpush3.bf16.xpose.msra.mxu1 %v1343_v51 }
 0x265   : > { %1188 = vmatmul.mubr.f32.vlgmr.msra.gmra.mrb[18].mxu1 %v462_v54 }
 0x338   : > { %v844_v55 = vpop.f32.mrb[18].mxu1 }
 0x339   : > { %v1189_v56 = vpop.f32.mrb[19].mxu1  ;;  %848 = vmax.xlane.f32.xlu0 %v844_v55 }
 0x3c6   : > { %v849_v57 = vpop.xlane.xlu0 %848 }
 0x3c7   : > { %v850_v58 = vsub.f32 %v844_v55, %v849_v57 }
 0x3c9   : > { %v851_v59 = vmul.f32 1.442695, %v850_v58 }
 0x3cb   : > { %1417 = vpow2.f32 %v851_v59 }
 0x3d5   : > { %v1418_v60 = vpop.eup %1417 }
 0x3d6   : > { %1223 = vmatmul.mubr.f32.vlgmr.msra.gmra.mrb[2].mxu0 %v1418_v60 }
 0x4a9   : > { %v919_v61 = vpop.f32.mrb[2].mxu0 }
 0x4aa   : > { %1419 = vrcp.f32 %v919_v61  ;;  %v1224_v48 = vpop.f32.mrb[3].mxu0 }
 0x4b4   : > { %v1420_v27 = vpop.eup %1419 }
 0x4b5   : > { %v924_v1 = vmul.f32 %v1420_v27, %v1418_v60 }
 0x4b7   : > { %v925_v2 = vmul.f32 %v924_v1, %v533_v0 }
 0x4b9   : > { %926 = vst [vmem:[%s279_s7] sm:$0xff] %v925_v2 }
 0x4ba PF: > { %p15_p8 = scmp.ge.s32.totalorder %s1545_s23, 4   ;;  %s1897_s18 = smov %s1477_s19 }
 0x4bb   : > { %s1898_s19 = smov %s1481_s20  ;;  %s1899_s20 = smov %s1555_s26 }
 0x4bc   : > { %s1900_s21 = smov %s1545_s23  ;;  %17 = sbr.rel (!%p15_p8) target bundleno = 3 (0x3), region = 86 }
 0x4c3   :  { %946 = vsyncpa [#allocation3], 1 }
 0x4c4   :  { %948 = vsyncpa [#allocation3 + $0x1], 1 }

</bundles_post_ra>
